<compile_context>
chip_gen: v7x
topology: tpu7x:2x2x1
jax: 0.10.0
libtpu: 0.0.40
codegen_flags: <defaults>
</compile_context>

<pallas_src>
import math

import jax
import jax.numpy as jnp
from jax.experimental import pallas as pl
from jax.experimental.pallas import tpu as pltpu

LANE = 128


# --------------------------- level-spec construction ---------------------------

def _spp_level_specs(H, W, num_levels):
    """Static (kh, kw, sh, sw, ph, pw, ho, wo) per pyramid level (PyTorch math)."""
    specs = []
    for i in range(num_levels):
        level = i + 1
        kh = math.ceil(H / level)
        kw = math.ceil(W / level)
        sh, sw = kh, kw
        ph = (kh * level - H + 1) // 2
        pw = (kw * level - W + 1) // 2
        ho = (H + 2 * ph - kh) // sh + 1
        wo = (W + 2 * pw - kw) // sw + 1
        specs.append((kh, kw, sh, sw, ph, pw, ho, wo))
    return specs


# --------------------------------- Pallas kernel --------------------------------

def _make_spp_kernel(H, W, specs, pool_type):
    """Kernel over one lane-tile: x_ref (H, W, tile_nc) -> o_ref (S, tile_nc).

    Row s of the output spans (level, oh, ow) in order; columns span (n, c).
    All window bounds are static, so the whole pyramid unrolls into a handful of
    per-lane reductions feeding a single dense store.
    """
    is_max = (pool_type == "maxpool")

    def kernel(x_ref, o_ref):
        rows = []
        for (kh, kw, sh, sw, ph, pw, ho, wo) in specs:
            inv = 1.0 / float(kh * kw)              # count_include_pad=True divisor
            for oh in range(ho):
                h0 = oh * sh - ph
                hs, he = max(h0, 0), min(h0 + kh, H)   # clip: pad is -inf for max,
                win = x_ref[hs:he, :, :]               # zero (excluded sum) for avg
                if is_max:
                    # H-reduction: elementwise VPU max across leading-dim slabs,
                    # shared by every W window of this output row.
                    hp = jnp.max(win, axis=0)                           # (W, tile)
                else:
                    hp = jnp.sum(win.astype(jnp.float32), axis=0)       # (W, tile) f32
                for ow in range(wo):
                    w0 = ow * sw - pw
                    ws, we = max(w0, 0), min(w0 + kw, W)
                    if is_max:
                        # W-reduction: one XLU sublane reduce per output element.
                        r = jnp.max(hp[ws:we, :], axis=0, keepdims=True)   # (1, tile)
                    else:
                        r = jnp.sum(hp[ws:we, :], axis=0, keepdims=True) * inv
                        r = r.astype(o_ref.dtype)
                    rows.append(r)
        o_ref[...] = jnp.concatenate(rows, axis=0)      # (S, tile), one dense store

    return kernel


# ----------------------------------- wrapper ------------------------------------

def spp_layer(x, num_levels, pool_type="maxpool"):
    """x: (N, C, H, W) -> (N, C * sum_l ho_l*wo_l), matching PyTorch SPPLayer."""
    N, C, H, W = x.shape
    specs = _spp_level_specs(H, W, num_levels)
    S = sum(ho * wo for (*_, ho, wo) in specs)
    NC = N * C

    # channels/batch on the lane axis; full spatial extent per block (level-1 pooling
    # is a global reduction, so spatial tiling would need a cross-tile reduction).
    x_hwnc = jnp.transpose(x, (2, 3, 0, 1)).reshape(H, W, NC)

    # Pick a lane tiling: 128-wide lane-dense blocks whenever possible (padding the
    # lane axis with zeros if NC > 128 but not a multiple of it); tiny inputs use a
    # single full-width block.
    if NC % LANE == 0:
        nc_pad, tile_nc = NC, LANE
    elif NC > LANE:
        nc_pad, tile_nc = pl.cdiv(NC, LANE) * LANE, LANE
        x_hwnc = jnp.pad(x_hwnc, ((0, 0), (0, 0), (0, nc_pad - NC)))
    else:
        nc_pad, tile_nc = NC, NC
    grid = (nc_pad // tile_nc,)

    itemsize = jnp.dtype(x.dtype).itemsize
    # separable work estimate: H-combines (ho*kh per column) + W-combines (kw per out)
    flops = NC * sum(ho * kh * W + ho * wo * kw
                     for (kh, kw, _, _, _, _, ho, wo) in specs)
    cost = pl.CostEstimate(
        flops=int(flops),
        transcendentals=0,
        bytes_accessed=int((H * W * NC + S * NC) * itemsize),
    )

    pooled = pl.pallas_call(
        _make_spp_kernel(H, W, specs, pool_type),
        out_shape=jax.ShapeDtypeStruct((S, nc_pad), x.dtype),
        grid_spec=pltpu.PrefetchScalarGridSpec(
            num_scalar_prefetch=0,
            grid=grid,
            in_specs=[pl.BlockSpec((H, W, tile_nc), lambda i: (0, 0, i))],
            out_specs=pl.BlockSpec((S, tile_nc), lambda i: (0, i)),
        ),
        compiler_params=pltpu.CompilerParams(dimension_semantics=("parallel",)),
        cost_estimate=cost,
    )(x_hwnc)

    pooled = pooled[:, :NC]

    # Tiny epilogue: restore PyTorch's per-level NCHW flatten order (c, oh, ow),
    # then concat levels -> per-batch feature vector.
    pooled = pooled.reshape(S, N, C)
    chunks, off = [], 0
    for (*_, ho, wo) in specs:
        sz = ho * wo
        t = pooled[off:off + sz]                          # (sz, N, C)
        chunks.append(jnp.transpose(t, (1, 2, 0)).reshape(N, C * sz))
        off += sz
    return jnp.concatenate(chunks, axis=1)                # (N, C * S)


# ------------------------------- pure-JAX reference ------------------------------

def spp_layer_ref(x, num_levels, pool_type="maxpool"):
    N, C, H, W = x.shape
    feats = []
    for (kh, kw, sh, sw, ph, pw, ho, wo) in _spp_level_specs(H, W, num_levels):
        pad = ((0, 0), (0, 0), (ph, ph), (pw, pw))
        if pool_type == "maxpool":
            t = jax.lax.reduce_window(x, -jnp.inf, jax.lax.max,
                                      (1, 1, kh, kw), (1, 1, sh, sw), pad)
        else:
            t = jax.lax.reduce_window(x, 0.0, jax.lax.add,
                                      (1, 1, kh, kw), (1, 1, sh, sw), pad) / (kh * kw)
        feats.append(t.reshape(N, -1))
    return jnp.concatenate(feats, axis=1)


# -------------------------------------- main --------------------------------------

if __name__ == "__main__":
    key = jax.random.PRNGKey(0)

    # SPPLayer(num_levels=4, pool_type='maxpool') on a (2, 4, 16, 16) input.
    N, C, H, W = 2, 4, 16, 16
    NUM_LEVELS = 4

    x = jax.random.normal(key, (N, C, H, W), jnp.float32)

    specs = _spp_level_specs(H, W, NUM_LEVELS)
    expected_feats = C * sum(ho * wo for (*_, ho, wo) in specs)   # 4 * 30 = 120

    # maxpool (module default)
    y = jax.block_until_ready(spp_layer(x, NUM_LEVELS, "maxpool"))
    y_ref = jax.block_until_ready(spp_layer_ref(x, NUM_LEVELS, "maxpool"))
    assert y.shape == (N, expected_feats), y.shape
    assert float(jnp.max(jnp.abs(y - y_ref))) < 1e-5, float(jnp.max(jnp.abs(y - y_ref)))

    # avgpool variant (count_include_pad=True semantics)
    ya = jax.block_until_ready(spp_layer(x, NUM_LEVELS, "avgpool"))
    ya_ref = jax.block_until_ready(spp_layer_ref(x, NUM_LEVELS, "avgpool"))
    assert ya.shape == (N, expected_feats), ya.shape
    assert float(jnp.max(jnp.abs(ya - ya_ref))) < 1e-4, float(jnp.max(jnp.abs(ya - ya_ref)))

    print("KERNEL_OK")
</pallas_src>

<mosaic_0001>
module attributes {stable_mosaic.version = 11 : i64} {
  func.func @kernel(%arg0: i32, %arg1: memref<16x16x8xf32, #tpu.memory_space<vmem>>, %arg2: memref<30x8xf32, #tpu.memory_space<vmem>>) attributes {dimension_semantics = [#tpu.dimension_semantics<parallel>], iteration_bounds = array<i64: 1>, scalar_prefetch = 0 : i64, scratch_operands = 0 : i64, tpu.core_type = #tpu.core_type<tc>, window_params = [{transform_indices = @transform_0, window_bounds = array<i64: 16, 16, 8>}, {transform_indices = @transform_1, window_bounds = array<i64: 30, 8>}]} {
    %c0 = arith.constant 0 : index
    %c0_0 = arith.constant 0 : index
    %c0_1 = arith.constant 0 : index
    %0 = vector.load %arg1[%c0, %c0_0, %c0_1] : memref<16x16x8xf32, #tpu.memory_space<vmem>>, vector<16x16x8xf32>
    %cst = arith.constant dense<0xFF800000> : vector<16x8xf32>
    %1 = vector.multi_reduction <maximumf>, %0, %cst [0] : vector<16x16x8xf32> to vector<16x8xf32>
    %cst_2 = arith.constant dense<0xFF800000> : vector<8xf32>
    %2 = vector.multi_reduction <maximumf>, %1, %cst_2 [0] : vector<16x8xf32> to vector<8xf32>
    %3 = vector.shape_cast %2 : vector<8xf32> to vector<1x8xf32>
    %c0_3 = arith.constant 0 : index
    %c0_4 = arith.constant 0 : index
    %c0_5 = arith.constant 0 : index
    %4 = vector.load %arg1[%c0_3, %c0_4, %c0_5] : memref<16x16x8xf32, #tpu.memory_space<vmem>>, vector<8x16x8xf32>
    %cst_6 = arith.constant dense<0xFF800000> : vector<16x8xf32>
    %5 = vector.multi_reduction <maximumf>, %4, %cst_6 [0] : vector<8x16x8xf32> to vector<16x8xf32>
    %6 = vector.extract_strided_slice %5 {offsets = [0, 0], sizes = [8, 8], strides = [1, 1]} : vector<16x8xf32> to vector<8x8xf32>
    %cst_7 = arith.constant dense<0xFF800000> : vector<8xf32>
    %7 = vector.multi_reduction <maximumf>, %6, %cst_7 [0] : vector<8x8xf32> to vector<8xf32>
    %8 = vector.shape_cast %7 : vector<8xf32> to vector<1x8xf32>
    %9 = vector.extract_strided_slice %5 {offsets = [8, 0], sizes = [8, 8], strides = [1, 1]} : vector<16x8xf32> to vector<8x8xf32>
    %cst_8 = arith.constant dense<0xFF800000> : vector<8xf32>
    %10 = vector.multi_reduction <maximumf>, %9, %cst_8 [0] : vector<8x8xf32> to vector<8xf32>
    %11 = vector.shape_cast %10 : vector<8xf32> to vector<1x8xf32>
    %c8 = arith.constant 8 : index
    %c0_9 = arith.constant 0 : index
    %c0_10 = arith.constant 0 : index
    %12 = vector.load %arg1[%c8, %c0_9, %c0_10] : memref<16x16x8xf32, #tpu.memory_space<vmem>>, vector<8x16x8xf32>
    %cst_11 = arith.constant dense<0xFF800000> : vector<16x8xf32>
    %13 = vector.multi_reduction <maximumf>, %12, %cst_11 [0] : vector<8x16x8xf32> to vector<16x8xf32>
    %14 = vector.extract_strided_slice %13 {offsets = [0, 0], sizes = [8, 8], strides = [1, 1]} : vector<16x8xf32> to vector<8x8xf32>
    %cst_12 = arith.constant dense<0xFF800000> : vector<8xf32>
    %15 = vector.multi_reduction <maximumf>, %14, %cst_12 [0] : vector<8x8xf32> to vector<8xf32>
    %16 = vector.shape_cast %15 : vector<8xf32> to vector<1x8xf32>
    %17 = vector.extract_strided_slice %13 {offsets = [8, 0], sizes = [8, 8], strides = [1, 1]} : vector<16x8xf32> to vector<8x8xf32>
    %cst_13 = arith.constant dense<0xFF800000> : vector<8xf32>
    %18 = vector.multi_reduction <maximumf>, %17, %cst_13 [0] : vector<8x8xf32> to vector<8xf32>
    %19 = vector.shape_cast %18 : vector<8xf32> to vector<1x8xf32>
    %c0_14 = arith.constant 0 : index
    %c0_15 = arith.constant 0 : index
    %c0_16 = arith.constant 0 : index
    %20 = vector.load %arg1[%c0_14, %c0_15, %c0_16] : memref<16x16x8xf32, #tpu.memory_space<vmem>>, vector<5x16x8xf32>
    %cst_17 = arith.constant dense<0xFF800000> : vector<16x8xf32>
    %21 = vector.multi_reduction <maximumf>, %20, %cst_17 [0] : vector<5x16x8xf32> to vector<16x8xf32>
    %22 = vector.extract_strided_slice %21 {offsets = [0, 0], sizes = [5, 8], strides = [1, 1]} : vector<16x8xf32> to vector<5x8xf32>
    %cst_18 = arith.constant dense<0xFF800000> : vector<8xf32>
    %23 = vector.multi_reduction <maximumf>, %22, %cst_18 [0] : vector<5x8xf32> to vector<8xf32>
    %24 = vector.shape_cast %23 : vector<8xf32> to vector<1x8xf32>
    %25 = vector.extract_strided_slice %21 {offsets = [5, 0], sizes = [6, 8], strides = [1, 1]} : vector<16x8xf32> to vector<6x8xf32>
    %cst_19 = arith.constant dense<0xFF800000> : vector<8xf32>
    %26 = vector.multi_reduction <maximumf>, %25, %cst_19 [0] : vector<6x8xf32> to vector<8xf32>
    %27 = vector.shape_cast %26 : vector<8xf32> to vector<1x8xf32>
    %28 = vector.extract_strided_slice %21 {offsets = [11, 0], sizes = [5, 8], strides = [1, 1]} : vector<16x8xf32> to vector<5x8xf32>
    %cst_20 = arith.constant dense<0xFF800000> : vector<8xf32>
    %29 = vector.multi_reduction <maximumf>, %28, %cst_20 [0] : vector<5x8xf32> to vector<8xf32>
    %30 = vector.shape_cast %29 : vector<8xf32> to vector<1x8xf32>
    %c5 = arith.constant 5 : index
    %c0_21 = arith.constant 0 : index
    %c0_22 = arith.constant 0 : index
    %31 = vector.load %arg1[%c5, %c0_21, %c0_22] : memref<16x16x8xf32, #tpu.memory_space<vmem>>, vector<6x16x8xf32>
    %cst_23 = arith.constant dense<0xFF800000> : vector<16x8xf32>
    %32 = vector.multi_reduction <maximumf>, %31, %cst_23 [0] : vector<6x16x8xf32> to vector<16x8xf32>
    %33 = vector.extract_strided_slice %32 {offsets = [0, 0], sizes = [5, 8], strides = [1, 1]} : vector<16x8xf32> to vector<5x8xf32>
    %cst_24 = arith.constant dense<0xFF800000> : vector<8xf32>
    %34 = vector.multi_reduction <maximumf>, %33, %cst_24 [0] : vector<5x8xf32> to vector<8xf32>
    %35 = vector.shape_cast %34 : vector<8xf32> to vector<1x8xf32>
    %36 = vector.extract_strided_slice %32 {offsets = [5, 0], sizes = [6, 8], strides = [1, 1]} : vector<16x8xf32> to vector<6x8xf32>
    %cst_25 = arith.constant dense<0xFF800000> : vector<8xf32>
    %37 = vector.multi_reduction <maximumf>, %36, %cst_25 [0] : vector<6x8xf32> to vector<8xf32>
    %38 = vector.shape_cast %37 : vector<8xf32> to vector<1x8xf32>
    %39 = vector.extract_strided_slice %32 {offsets = [11, 0], sizes = [5, 8], strides = [1, 1]} : vector<16x8xf32> to vector<5x8xf32>
    %cst_26 = arith.constant dense<0xFF800000> : vector<8xf32>
    %40 = vector.multi_reduction <maximumf>, %39, %cst_26 [0] : vector<5x8xf32> to vector<8xf32>
    %41 = vector.shape_cast %40 : vector<8xf32> to vector<1x8xf32>
    %c11 = arith.constant 11 : index
    %c0_27 = arith.constant 0 : index
    %c0_28 = arith.constant 0 : index
    %42 = vector.load %arg1[%c11, %c0_27, %c0_28] : memref<16x16x8xf32, #tpu.memory_space<vmem>>, vector<5x16x8xf32>
    %cst_29 = arith.constant dense<0xFF800000> : vector<16x8xf32>
    %43 = vector.multi_reduction <maximumf>, %42, %cst_29 [0] : vector<5x16x8xf32> to vector<16x8xf32>
    %44 = vector.extract_strided_slice %43 {offsets = [0, 0], sizes = [5, 8], strides = [1, 1]} : vector<16x8xf32> to vector<5x8xf32>
    %cst_30 = arith.constant dense<0xFF800000> : vector<8xf32>
    %45 = vector.multi_reduction <maximumf>, %44, %cst_30 [0] : vector<5x8xf32> to vector<8xf32>
    %46 = vector.shape_cast %45 : vector<8xf32> to vector<1x8xf32>
    %47 = vector.extract_strided_slice %43 {offsets = [5, 0], sizes = [6, 8], strides = [1, 1]} : vector<16x8xf32> to vector<6x8xf32>
    %cst_31 = arith.constant dense<0xFF800000> : vector<8xf32>
    %48 = vector.multi_reduction <maximumf>, %47, %cst_31 [0] : vector<6x8xf32> to vector<8xf32>
    %49 = vector.shape_cast %48 : vector<8xf32> to vector<1x8xf32>
    %50 = vector.extract_strided_slice %43 {offsets = [11, 0], sizes = [5, 8], strides = [1, 1]} : vector<16x8xf32> to vector<5x8xf32>
    %cst_32 = arith.constant dense<0xFF800000> : vector<8xf32>
    %51 = vector.multi_reduction <maximumf>, %50, %cst_32 [0] : vector<5x8xf32> to vector<8xf32>
    %52 = vector.shape_cast %51 : vector<8xf32> to vector<1x8xf32>
    %c0_33 = arith.constant 0 : index
    %c0_34 = arith.constant 0 : index
    %c0_35 = arith.constant 0 : index
    %53 = vector.load %arg1[%c0_33, %c0_34, %c0_35] : memref<16x16x8xf32, #tpu.memory_space<vmem>>, vector<4x16x8xf32>
    %cst_36 = arith.constant dense<0xFF800000> : vector<16x8xf32>
    %54 = vector.multi_reduction <maximumf>, %53, %cst_36 [0] : vector<4x16x8xf32> to vector<16x8xf32>
    %55 = vector.extract_strided_slice %54 {offsets = [0, 0], sizes = [4, 8], strides = [1, 1]} : vector<16x8xf32> to vector<4x8xf32>
    %cst_37 = arith.constant dense<0xFF800000> : vector<8xf32>
    %56 = vector.multi_reduction <maximumf>, %55, %cst_37 [0] : vector<4x8xf32> to vector<8xf32>
    %57 = vector.shape_cast %56 : vector<8xf32> to vector<1x8xf32>
    %58 = vector.extract_strided_slice %54 {offsets = [4, 0], sizes = [4, 8], strides = [1, 1]} : vector<16x8xf32> to vector<4x8xf32>
    %cst_38 = arith.constant dense<0xFF800000> : vector<8xf32>
    %59 = vector.multi_reduction <maximumf>, %58, %cst_38 [0] : vector<4x8xf32> to vector<8xf32>
    %60 = vector.shape_cast %59 : vector<8xf32> to vector<1x8xf32>
    %61 = vector.extract_strided_slice %54 {offsets = [8, 0], sizes = [4, 8], strides = [1, 1]} : vector<16x8xf32> to vector<4x8xf32>
    %cst_39 = arith.constant dense<0xFF800000> : vector<8xf32>
    %62 = vector.multi_reduction <maximumf>, %61, %cst_39 [0] : vector<4x8xf32> to vector<8xf32>
    %63 = vector.shape_cast %62 : vector<8xf32> to vector<1x8xf32>
    %64 = vector.extract_strided_slice %54 {offsets = [12, 0], sizes = [4, 8], strides = [1, 1]} : vector<16x8xf32> to vector<4x8xf32>
    %cst_40 = arith.constant dense<0xFF800000> : vector<8xf32>
    %65 = vector.multi_reduction <maximumf>, %64, %cst_40 [0] : vector<4x8xf32> to vector<8xf32>
    %66 = vector.shape_cast %65 : vector<8xf32> to vector<1x8xf32>
    %c4 = arith.constant 4 : index
    %c0_41 = arith.constant 0 : index
    %c0_42 = arith.constant 0 : index
    %67 = vector.load %arg1[%c4, %c0_41, %c0_42] : memref<16x16x8xf32, #tpu.memory_space<vmem>>, vector<4x16x8xf32>
    %cst_43 = arith.constant dense<0xFF800000> : vector<16x8xf32>
    %68 = vector.multi_reduction <maximumf>, %67, %cst_43 [0] : vector<4x16x8xf32> to vector<16x8xf32>
    %69 = vector.extract_strided_slice %68 {offsets = [0, 0], sizes = [4, 8], strides = [1, 1]} : vector<16x8xf32> to vector<4x8xf32>
    %cst_44 = arith.constant dense<0xFF800000> : vector<8xf32>
    %70 = vector.multi_reduction <maximumf>, %69, %cst_44 [0] : vector<4x8xf32> to vector<8xf32>
    %71 = vector.shape_cast %70 : vector<8xf32> to vector<1x8xf32>
    %72 = vector.extract_strided_slice %68 {offsets = [4, 0], sizes = [4, 8], strides = [1, 1]} : vector<16x8xf32> to vector<4x8xf32>
    %cst_45 = arith.constant dense<0xFF800000> : vector<8xf32>
    %73 = vector.multi_reduction <maximumf>, %72, %cst_45 [0] : vector<4x8xf32> to vector<8xf32>
    %74 = vector.shape_cast %73 : vector<8xf32> to vector<1x8xf32>
    %75 = vector.extract_strided_slice %68 {offsets = [8, 0], sizes = [4, 8], strides = [1, 1]} : vector<16x8xf32> to vector<4x8xf32>
    %cst_46 = arith.constant dense<0xFF800000> : vector<8xf32>
    %76 = vector.multi_reduction <maximumf>, %75, %cst_46 [0] : vector<4x8xf32> to vector<8xf32>
    %77 = vector.shape_cast %76 : vector<8xf32> to vector<1x8xf32>
    %78 = vector.extract_strided_slice %68 {offsets = [12, 0], sizes = [4, 8], strides = [1, 1]} : vector<16x8xf32> to vector<4x8xf32>
    %cst_47 = arith.constant dense<0xFF800000> : vector<8xf32>
    %79 = vector.multi_reduction <maximumf>, %78, %cst_47 [0] : vector<4x8xf32> to vector<8xf32>
    %80 = vector.shape_cast %79 : vector<8xf32> to vector<1x8xf32>
    %c8_48 = arith.constant 8 : index
    %c0_49 = arith.constant 0 : index
    %c0_50 = arith.constant 0 : index
    %81 = vector.load %arg1[%c8_48, %c0_49, %c0_50] : memref<16x16x8xf32, #tpu.memory_space<vmem>>, vector<4x16x8xf32>
    %cst_51 = arith.constant dense<0xFF800000> : vector<16x8xf32>
    %82 = vector.multi_reduction <maximumf>, %81, %cst_51 [0] : vector<4x16x8xf32> to vector<16x8xf32>
    %83 = vector.extract_strided_slice %82 {offsets = [0, 0], sizes = [4, 8], strides = [1, 1]} : vector<16x8xf32> to vector<4x8xf32>
    %cst_52 = arith.constant dense<0xFF800000> : vector<8xf32>
    %84 = vector.multi_reduction <maximumf>, %83, %cst_52 [0] : vector<4x8xf32> to vector<8xf32>
    %85 = vector.shape_cast %84 : vector<8xf32> to vector<1x8xf32>
    %86 = vector.extract_strided_slice %82 {offsets = [4, 0], sizes = [4, 8], strides = [1, 1]} : vector<16x8xf32> to vector<4x8xf32>
    %cst_53 = arith.constant dense<0xFF800000> : vector<8xf32>
    %87 = vector.multi_reduction <maximumf>, %86, %cst_53 [0] : vector<4x8xf32> to vector<8xf32>
    %88 = vector.shape_cast %87 : vector<8xf32> to vector<1x8xf32>
    %89 = vector.extract_strided_slice %82 {offsets = [8, 0], sizes = [4, 8], strides = [1, 1]} : vector<16x8xf32> to vector<4x8xf32>
    %cst_54 = arith.constant dense<0xFF800000> : vector<8xf32>
    %90 = vector.multi_reduction <maximumf>, %89, %cst_54 [0] : vector<4x8xf32> to vector<8xf32>
    %91 = vector.shape_cast %90 : vector<8xf32> to vector<1x8xf32>
    %92 = vector.extract_strided_slice %82 {offsets = [12, 0], sizes = [4, 8], strides = [1, 1]} : vector<16x8xf32> to vector<4x8xf32>
    %cst_55 = arith.constant dense<0xFF800000> : vector<8xf32>
    %93 = vector.multi_reduction <maximumf>, %92, %cst_55 [0] : vector<4x8xf32> to vector<8xf32>
    %94 = vector.shape_cast %93 : vector<8xf32> to vector<1x8xf32>
    %c12 = arith.constant 12 : index
    %c0_56 = arith.constant 0 : index
    %c0_57 = arith.constant 0 : index
    %95 = vector.load %arg1[%c12, %c0_56, %c0_57] : memref<16x16x8xf32, #tpu.memory_space<vmem>>, vector<4x16x8xf32>
    %cst_58 = arith.constant dense<0xFF800000> : vector<16x8xf32>
    %96 = vector.multi_reduction <maximumf>, %95, %cst_58 [0] : vector<4x16x8xf32> to vector<16x8xf32>
    %97 = vector.extract_strided_slice %96 {offsets = [0, 0], sizes = [4, 8], strides = [1, 1]} : vector<16x8xf32> to vector<4x8xf32>
    %cst_59 = arith.constant dense<0xFF800000> : vector<8xf32>
    %98 = vector.multi_reduction <maximumf>, %97, %cst_59 [0] : vector<4x8xf32> to vector<8xf32>
    %99 = vector.shape_cast %98 : vector<8xf32> to vector<1x8xf32>
    %100 = vector.extract_strided_slice %96 {offsets = [4, 0], sizes = [4, 8], strides = [1, 1]} : vector<16x8xf32> to vector<4x8xf32>
    %cst_60 = arith.constant dense<0xFF800000> : vector<8xf32>
    %101 = vector.multi_reduction <maximumf>, %100, %cst_60 [0] : vector<4x8xf32> to vector<8xf32>
    %102 = vector.shape_cast %101 : vector<8xf32> to vector<1x8xf32>
    %103 = vector.extract_strided_slice %96 {offsets = [8, 0], sizes = [4, 8], strides = [1, 1]} : vector<16x8xf32> to vector<4x8xf32>
    %cst_61 = arith.constant dense<0xFF800000> : vector<8xf32>
    %104 = vector.multi_reduction <maximumf>, %103, %cst_61 [0] : vector<4x8xf32> to vector<8xf32>
    %105 = vector.shape_cast %104 : vector<8xf32> to vector<1x8xf32>
    %106 = vector.extract_strided_slice %96 {offsets = [12, 0], sizes = [4, 8], strides = [1, 1]} : vector<16x8xf32> to vector<4x8xf32>
    %cst_62 = arith.constant dense<0xFF800000> : vector<8xf32>
    %107 = vector.multi_reduction <maximumf>, %106, %cst_62 [0] : vector<4x8xf32> to vector<8xf32>
    %108 = vector.shape_cast %107 : vector<8xf32> to vector<1x8xf32>
    %109 = tpu.concatenate %3, %8, %11, %16, %19, %24, %27, %30, %35, %38, %41, %46, %49, %52, %57, %60 in 0 : vector<1x8xf32>, vector<1x8xf32>, vector<1x8xf32>, vector<1x8xf32>, vector<1x8xf32>, vector<1x8xf32>, vector<1x8xf32>, vector<1x8xf32>, vector<1x8xf32>, vector<1x8xf32>, vector<1x8xf32>, vector<1x8xf32>, vector<1x8xf32>, vector<1x8xf32>, vector<1x8xf32>, vector<1x8xf32> -> vector<16x8xf32>
    %110 = tpu.concatenate %63, %66, %71, %74, %77, %80, %85, %88, %91, %94, %99, %102, %105, %108 in 0 : vector<1x8xf32>, vector<1x8xf32>, vector<1x8xf32>, vector<1x8xf32>, vector<1x8xf32>, vector<1x8xf32>, vector<1x8xf32>, vector<1x8xf32>, vector<1x8xf32>, vector<1x8xf32>, vector<1x8xf32>, vector<1x8xf32>, vector<1x8xf32>, vector<1x8xf32> -> vector<14x8xf32>
    %111 = tpu.concatenate %109, %110 in 0 : vector<16x8xf32>, vector<14x8xf32> -> vector<30x8xf32>
    %c0_63 = arith.constant 0 : index
    %c0_64 = arith.constant 0 : index
    %112 = vector.load %arg2[%c0_63, %c0_64] : memref<30x8xf32, #tpu.memory_space<vmem>>, vector<30x8xf32>
    tpu.vector_store %arg2[%c0_63, %c0_64], %111 {strides = array<i32>} : memref<30x8xf32, #tpu.memory_space<vmem>>, vector<30x8xf32>,
    return
  }
  func.func @transform_0(%arg0: i32) -> (i32, i32, i32) {
    %c0_i32 = arith.constant 0 : i32
    %c0_i32_0 = arith.constant 0 : i32
    %c0_i32_1 = arith.constant 0 : i32
    return %c0_i32, %c0_i32_0, %arg0 : i32, i32, i32
  }
  func.func @transform_1(%arg0: i32) -> (i32, i32) {
    %c0_i32 = arith.constant 0 : i32
    %c0_i32_0 = arith.constant 0 : i32
    return %c0_i32, %arg0 : i32, i32
  }
}

</mosaic_0001>

<bundles_post_ra>
// kernel: tpu_custom_call.1
= control target key start
LH: loop header
LB: loop body
LE: loop exit
PB: predicated region body
PF: predicated region fallthrough
CT: control target
= control target key end

     0   :  { %vm40_vm0 = vcmask 64512   ;;  %vm191_vm1 = vcmask 61440   ;;  %vm199_vm2 = vcmask 64517   ;;  %vm201_vm3 = vcmask 59392   ;;  %s1040_s0 = inlined_call_operand.vmem [shape: f32[16,16,8], index: 0, kind: input, shape index: {}]   ;;  %s1041_s1 = inlined_call_operand.vmem [shape: f32[30,8], index: 1, kind: output, shape index: {}]  }
   0x1   :  { %v8_v0 = vld [vmem:[%s1040_s0] sm:$0xff]  ;;  %v9_v1 = vld [vmem:[%s1040_s0 + $0x8] sm:$0xff]  ;;  %v10_v2 = vld [vmem:[%s1040_s0 + $0x10] sm:$0xff]  ;;  %vm210_vm4 = vcmask 64515   ;;  %vm330_vm5 = vcmask 60416   ;;  %vm338_vm6 = vcmask 64516  }
   0x2   :  { %v11_v3 = vld [vmem:[%s1040_s0 + $0x18] sm:$0xff]  ;;  %v12_v4 = vld [vmem:[%s1040_s0 + $0x20] sm:$0xff]  ;;  %v13_v5 = vld [vmem:[%s1040_s0 + $0x28] sm:$0xff]  ;;  %v41_v6 = vsel %vm40_vm0, %v8_v0, -inf  ;;  %v42_v7 = vsel %vm40_vm0, %v10_v2, -inf  ;;  %v72_v8 = vsel %vm40_vm0, %v9_v1, -inf }
   0x3   :  { %v14_v9 = vld [vmem:[%s1040_s0 + $0x30] sm:$0xff]  ;;  %v15_v10 = vld [vmem:[%s1040_s0 + $0x38] sm:$0xff]  ;;  %v16_v11 = vld [vmem:[%s1040_s0 + $0x40] sm:$0xff]  ;;  %v43_v12 = vsel %vm40_vm0, %v12_v4, -inf  ;;  %v73_v13 = vsel %vm40_vm0, %v11_v3, -inf  ;;  %v74_v14 = vsel %vm40_vm0, %v13_v5, -inf }
   0x4   :  { %v17_v15 = vld [vmem:[%s1040_s0 + $0x48] sm:$0xff]  ;;  %v18_v16 = vld [vmem:[%s1040_s0 + $0x50] sm:$0xff]  ;;  %v19_v17 = vld [vmem:[%s1040_s0 + $0x58] sm:$0xff]  ;;  %v640_v18 = vmax.f32 %v41_v6, %v43_v12  ;;  %v45_v19 = vsel %vm40_vm0, %v14_v9, -inf  ;;  %v644_v20 = vsel %vm40_vm0, %v16_v11, -inf  ;;  %v646_v21 = vmax.f32 %v72_v8, %v74_v14 }
   0x5   :  { %v20_v22 = vld [vmem:[%s1040_s0 + $0x60] sm:$0xff]  ;;  %v22_v23 = vld [vmem:[%s1040_s0 + $0x70] sm:$0xff]  ;;  %v654_v24 = vmax.f32 %v42_v7, %v45_v19  ;;  %v657_v25 = vsel %vm40_vm0, %v18_v16, -inf  ;;  %v76_v26 = vsel %vm40_vm0, %v15_v10, -inf  ;;  %v661_v27 = vsel %vm40_vm0, %v17_v15, -inf  ;;  %v21_v28 = vld [vmem:[%s1040_s0 + $0x68] sm:$0xff] }
   0x6   :  { %v23_v29 = vld [vmem:[%s1040_s0 + $0x78] sm:$0xff]  ;;  %v24_v30 = vld [vmem:[%s1040_s0 + $0x80] sm:$0xff]  ;;  %v674_v31 = vmax.f32 %v640_v18, %v644_v20  ;;  %v677_v32 = vsel %vm40_vm0, %v20_v22, -inf  ;;  %v680_v33 = vsel %vm40_vm0, %v22_v23, -inf  ;;  %v682_v34 = vmax.f32 %v73_v13, %v76_v26  ;;  %v26_v35 = vld [vmem:[%s1040_s0 + $0x90] sm:$0xff] }
   0x7   :  { %v28_v36 = vld [vmem:[%s1040_s0 + $0xa0] sm:$0xff]  ;;  %v50_v37 = vmax.f32 %v654_v24, %v657_v25  ;;  %v693_v38 = vsel %vm40_vm0, %v24_v30, -inf  ;;  %v697_v39 = vmax.f32 %v646_v21, %v661_v27  ;;  %v700_v40 = vsel %vm40_vm0, %v19_v17, -inf  ;;  %v25_v41 = vld [vmem:[%s1040_s0 + $0x88] sm:$0xff]  ;;  %v30_v42 = vld [vmem:[%s1040_s0 + $0xb0] sm:$0xff] }
   0x8   :  { %v52_v43 = vmax.f32 %v674_v31, %v677_v32  ;;  %v711_v44 = vsel %vm40_vm0, %v26_v35, -inf  ;;  %v714_v45 = vsel %vm40_vm0, %v28_v36, -inf  ;;  %v81_v46 = vmax.f32 %v682_v34, %v700_v40  ;;  %v27_v47 = vld [vmem:[%s1040_s0 + $0x98] sm:$0xff]  ;;  %v32_v48 = vld [vmem:[%s1040_s0 + $0xc0] sm:$0xff]  ;;  %v34_v49 = vld [vmem:[%s1040_s0 + $0xd0] sm:$0xff] }
   0x9   :  { %v54_v50 = vmax.f32 %v50_v37, %v680_v33  ;;  %v729_v51 = vsel %vm40_vm0, %v30_v42, -inf  ;;  %v732_v52 = vsel %vm40_vm0, %v21_v28, -inf  ;;  %v735_v53 = vsel %vm40_vm0, %v23_v29, -inf  ;;  %v29_v54 = vld [vmem:[%s1040_s0 + $0xa8] sm:$0xff]  ;;  %v31_v55 = vld [vmem:[%s1040_s0 + $0xb8] sm:$0xff]  ;;  %v36_v56 = vld [vmem:[%s1040_s0 + $0xe0] sm:$0xff] }
   0xa   :  { %v56_v57 = vmax.f32 %v52_v43, %v693_v38  ;;  %v748_v58 = vsel %vm40_vm0, %v32_v48, -inf  ;;  %v751_v59 = vsel %vm40_vm0, %v34_v49, -inf  ;;  %v83_v60 = vmax.f32 %v697_v39, %v732_v52  ;;  %v33_v61 = vld [vmem:[%s1040_s0 + $0xc8] sm:$0xff]  ;;  %v35_v62 = vld [vmem:[%s1040_s0 + $0xd8] sm:$0xff]  ;;  %v38_v63 = vld [vmem:[%s1040_s0 + $0xf0] sm:$0xff] }
   0xb   :  { %v58_v0 = vmax.f32 %v54_v50, %v711_v44  ;;  %v766_v1 = vsel %vm40_vm0, %v36_v56, -inf  ;;  %v85_v2 = vmax.f32 %v81_v46, %v735_v53  ;;  %v770_v3 = vsel %vm40_vm0, %v25_v41, -inf  ;;  %v37_v4 = vld [vmem:[%s1040_s0 + $0xe8] sm:$0xff]  ;;  %v39_v5 = vld [vmem:[%s1040_s0 + $0xf8] sm:$0xff] }
   0xc   :  { %v60_v6 = vmax.f32 %v56_v57, %v714_v45  ;;  %v780_v7 = vsel %vm40_vm0, %v38_v63, -inf  ;;  %v87_v8 = vmax.f32 %v83_v60, %v770_v3  ;;  %v784_v9 = vsel %vm40_vm0, %v27_v47, -inf }
   0xd   :  { %v62_v10 = vmax.f32 %v58_v0, %v729_v51  ;;  %v89_v11 = vmax.f32 %v85_v2, %v784_v9  ;;  %v789_v12 = vsel %vm40_vm0, %v29_v54, -inf  ;;  %v792_v13 = vsel %vm40_vm0, %v31_v55, -inf }
   0xe   :  { %v64_v14 = vmax.f32 %v60_v6, %v748_v58  ;;  %v91_v15 = vmax.f32 %v87_v8, %v789_v12  ;;  %v797_v16 = vsel %vm40_vm0, %v33_v61, -inf  ;;  %v800_v17 = vsel %vm40_vm0, %v35_v62, -inf }
   0xf   :  { %v66_v19 = vmax.f32 %v62_v10, %v751_v59  ;;  %v93_v22 = vmax.f32 %v89_v11, %v792_v13  ;;  %v805_v23 = vsel %vm40_vm0, %v37_v4, -inf  ;;  %v808_v26 = vsel %vm40_vm0, %v39_v5, -inf }
  0x10   :  { %v68_v28 = vmax.f32 %v64_v14, %v766_v1  ;;  %v95_v29 = vmax.f32 %v91_v15, %v797_v16  ;;  %v112_v30 = vmax.f32 %v52_v43, %v54_v50  ;;  %v113_v35 = vmax.f32 %v83_v60, %v85_v2 }
  0x11   :  { %v70_v36 = vmax.f32 %v66_v19, %v780_v7  ;;  %v97_v37 = vmax.f32 %v93_v22, %v800_v17  ;;  %v816_v41 = vmax.f32 %v693_v38, %v714_v45  ;;  %v820_v42 = vmax.f32 %v711_v44, %v729_v51 }
  0x12   :  { %v99_v46 = vmax.f32 %v95_v29, %v805_v23  ;;  %v114_v47 = vsel %vm40_vm0, %v112_v30, -inf  ;;  %v121_v43 = vsel %vm40_vm0, %v113_v35, -inf  ;;  %v827_v48 = vmax.f32 %v770_v3, %v789_v12 }
  0x13   :  { %v71_v49 = vmax.f32 %v68_v28, %v70_v36  ;;  %v101_v50 = vmax.f32 %v97_v37, %v808_v26  ;;  %v115_v54 = vrot.slane %v114_v47, 4  ;;  %v122_v55 = vrot.slane %v121_v43, 4 }
  0x14   :  { %v152_v56 = vmax.f32 %v816_v41, %v748_v58  ;;  %v154_v57 = vmax.f32 %v820_v42, %v751_v59  ;;  %v836_v60 = vmax.f32 %v784_v9, %v792_v13  ;;  %v167_v61 = vmax.f32 %v827_v48, %v797_v16 }
  0x15   :  { %v102_v62 = vmax.f32 %v99_v46, %v101_v50  ;;  %v103_v63 = vsel %vm40_vm0, %v71_v49, -inf  ;;  %v116_v0 = vmax.f32 %v114_v47, %v115_v54  ;;  %v123_v2 = vmax.f32 %v121_v43, %v122_v55 }
  0x16   :  { %v156_v4 = vmax.f32 %v152_v56, %v766_v1  ;;  %v158_v5 = vmax.f32 %v154_v57, %v780_v7  ;;  %v169_v6 = vmax.f32 %v836_v60, %v800_v17  ;;  %v171_v8 = vmax.f32 %v167_v61, %v805_v23 }
  0x17   :  { %v104_v10 = vsel %vm40_vm0, %v102_v62, -inf  ;;  %v117_v11 = vrot.slane %v116_v0, 2  ;;  %v124_v14 = vrot.slane %v123_v2, 2  ;;  %v189_v15 = vmax.f32 %v674_v31, %v654_v24 }
  0x18   :  { %v105_v19 = vmax.f32 %v103_v63, %v104_v10  ;;  %v159_v22 = vmax.f32 %v156_v4, %v158_v5  ;;  %v173_v28 = vmax.f32 %v169_v6, %v808_v26  ;;  %v190_v29 = vmax.f32 %v697_v39, %v682_v34 }
  0x19   :  { %v118_v30 = vmax.f32 %v116_v0, %v117_v11  ;;  %v125_v35 = vmax.f32 %v123_v2, %v124_v14  ;;  %v192_v36 = vsel %vm191_vm1, %v189_v15, -inf  ;;  %v200_v37 = vsel %vm199_vm2, %v189_v15, -inf }
  0x1a   :  { %v106_v46 = vrot.slane %v105_v19, 4  ;;  %v174_v47 = vmax.f32 %v171_v8, %v173_v28  ;;  %v175_v43 = vsel %vm40_vm0, %v159_v22, -inf  ;;  %v193_v49 = vrot.slane %v192_v36, 4 }
  0x1b   :  { %v119_v50 = vrot.slane %v118_v30, 1  ;;  %v176_v31 = vrot.slane %v175_v43, 4  ;;  %v202_v54 = vsel %vm201_vm3, %v190_v29, -inf  ;;  %v126_v62 = vrot.slane %v125_v35, 1 }
  0x1c   :  { %v107_v55 = vmax.f32 %v105_v19, %v106_v46  ;;  %v182_v56 = vsel %vm40_vm0, %v174_v47, -inf  ;;  %v194_v39 = vmax.f32 %v192_v36, %v193_v49  ;;  %v203_v57 = vmax.f32 %v200_v37, %v202_v54 }
  0x1d   :  { %v857_v61 = vmax.f32 %v118_v30, %v119_v50  ;;  %v177_v63 = vmax.f32 %v175_v43, %v176_v31  ;;  %v183_v0 = vrot.slane %v182_v56, 4  ;;  %v211_v6 = vsel %vm210_vm4, %v190_v29, -inf }
  0x1e   :  { %v108_v2 = vrot.slane %v107_v55, 2  ;;  %v195_v4 = vrot.slane %v194_v39, 2  ;;  %v204_v5 = vrot.slane %v203_v57, 4  ;;  %v212_v11 = vrot.slane %v211_v6, 4 }
  0x1f   :  { %v178_v8 = vrot.slane %v177_v63, 2  ;;  %v184_v10 = vmax.f32 %v182_v56, %v183_v0  ;;  %v862_v14 = vmax.f32 %v657_v25, %v680_v33  ;;  %v236_v28 = vmax.f32 %v677_v32, %v693_v38 }
  0x20   :  { %v109_v15 = vmax.f32 %v107_v55, %v108_v2  ;;  %v196_v19 = vmax.f32 %v194_v39, %v195_v4  ;;  %v205_v22 = vmax.f32 %v203_v57, %v204_v5  ;;  %v213_v37 = vmax.f32 %v211_v6, %v212_v11 }
  0x21   :  { %v179_v30 = vmax.f32 %v177_v63, %v178_v8  ;;  %v185_v36 = vrot.slane %v184_v10, 2  ;;  %v238_v46 = vmax.f32 %v862_v14, %v711_v44  ;;  %v240_v49 = vmax.f32 %v236_v28, %v714_v45 }
  0x22   :  { %v110_v29 = vrot.slane %v109_v15, 1  ;;  %v197_v47 = vrot.slane %v196_v19, 1  ;;  %v206_v43 = vrot.slane %v205_v22, 2  ;;  %v214_v33 = vrot.slane %v213_v37, 2 }
  0x23   :  { %v180_v50 = vrot.slane %v179_v30, 1  ;;  %v186_v25 = vmax.f32 %v184_v10, %v185_v36  ;;  %v871_v31 = vmax.f32 %v700_v40, %v735_v53  ;;  %v875_v38 = vmax.f32 %v125_v35, %v126_v62 }
  0x24   :  { %v873_v54 = vmax.f32 %v109_v15, %v110_v29  ;;  %v207_v55 = vmax.f32 %v205_v22, %v206_v43  ;;  %v241_v56 = vmax.f32 %v238_v46, %v240_v49  ;;  %v877_v39 = vmax.f32 %v196_v19, %v197_v47 }
  0x25   :  { %v187_v44 = vrot.slane %v186_v25, 1  ;;  %v215_v57 = vmax.f32 %v213_v37, %v214_v33  ;;  %v247_v45 = vmax.f32 %v732_v52, %v770_v3  ;;  %v881_v63 = vmax.f32 %v179_v30, %v180_v50 }
  0x26   :  { %v208_v0 = vrot.slane %v207_v55, 1  ;;  %v249_v40 = vmax.f32 %v871_v31, %v784_v9  ;;  %v253_v53 = vsel %vm191_vm1, %v241_v56, -inf  ;;  %v260_v4 = vsel %vm199_vm2, %v241_v56, -inf }
  0x27   :  { %v216_v35 = vrot.slane %v215_v57, 1  ;;  %v251_v62 = vmax.f32 %v247_v45, %v789_v12  ;;  %v254_v2 = vrot.slane %v253_v53, 4  ;;  %v888_v5 = vmax.f32 %v186_v25, %v187_v44 }
  0x28   :  { %v290_v6 = vmax.f32 %v729_v51, %v751_v59  ;;  %v894_v3 = vmax.f32 %v748_v58, %v766_v1  ;;  %v299_v9 = vmax.f32 %v792_v13, %v800_v17  ;;  %v898_v8 = vmax.f32 %v207_v55, %v208_v0 }
  0x29   :  { %v252_v10 = vmax.f32 %v249_v40, %v251_v62  ;;  %v255_v11 = vmax.f32 %v253_v53, %v254_v2  ;;  %v902_v12 = vmax.f32 %v797_v16, %v805_v23  ;;  %v904_v15 = vmax.f32 %v215_v57, %v216_v35 }
  0x2a   :  { %v294_v19 = vmax.f32 %v290_v6, %v780_v7  ;;  %v303_v51 = vmax.f32 %v299_v9, %v808_v26  ;;  %v328_v58 = vmax.f32 %v640_v18, %v654_v24  ;;  %v329_v28 = vmax.f32 %v646_v21, %v682_v34 }
  0x2b   :  { %v256_v1 = vrot.slane %v255_v11, 2  ;;  %v261_v13 = vsel %vm201_vm3, %v252_v10, -inf  ;;  %v269_v22 = vsel %vm210_vm4, %v252_v10, -inf  ;;  %v372_v18 = vmax.f32 %v644_v20, %v677_v32 }
  0x2c   :  { %v262_v30 = vmax.f32 %v260_v4, %v261_v13  ;;  %v270_v16 = vrot.slane %v269_v22, 4  ;;  %v295_v23 = vmax.f32 %v294_v19, %v894_v3  ;;  %v304_v36 = vmax.f32 %v303_v51, %v902_v12 }
  0x2d   :  { %v257_v37 = vmax.f32 %v255_v11, %v256_v1  ;;  %v331_v46 = vsel %vm330_vm5, %v328_v58, -inf  ;;  %v339_v29 = vsel %vm338_vm6, %v328_v58, -inf  ;;  %v346_v25 = vsel %vm330_vm5, %v329_v28, -inf }
  0x2e   :  { %v263_v24 = vrot.slane %v262_v30, 4  ;;  %v271_v47 = vmax.f32 %v269_v22, %v270_v16  ;;  %v305_v43 = vsel %vm191_vm1, %v295_v23, -inf  ;;  %v312_v21 = vsel %vm199_vm2, %v295_v23, -inf }
  0x2f   :  { %v306_v34 = vrot.slane %v305_v43, 4  ;;  %v313_v49 = vsel %vm201_vm3, %v304_v36, -inf  ;;  %v321_v50 = vsel %vm210_vm4, %v304_v36, -inf  ;;  %v258_v57 = vrot.slane %v257_v37, 1 }
  0x30   :  { %v264_v33 = vmax.f32 %v262_v30, %v263_v24  ;;  %v272_v55 = vrot.slane %v271_v47, 2  ;;  %v314_v56 = vmax.f32 %v312_v21, %v313_v49  ;;  %v322_v44 = vrot.slane %v321_v50, 4 }
  0x31   :  { %v307_v45 = vmax.f32 %v305_v43, %v306_v34  ;;  %v332_v20 = vrot.slane %v331_v46, 4  ;;  %v340_v32 = vrot.slane %v339_v29, 4  ;;  %v347_v6 = vrot.slane %v346_v25, 4 }
  0x32   :  { %v265_v0 = vrot.slane %v264_v33, 2  ;;  %v273_v40 = vmax.f32 %v271_v47, %v272_v55  ;;  %v315_v53 = vrot.slane %v314_v56, 4  ;;  %v323_v35 = vmax.f32 %v321_v50, %v322_v44 }
  0x33   :  { %v308_v62 = vrot.slane %v307_v45, 2  ;;  %v333_v2 = vmax.f32 %v331_v46, %v332_v20  ;;  %v341_v4 = vmax.f32 %v339_v29, %v340_v32  ;;  %v348_v13 = vmax.f32 %v346_v25, %v347_v6 }
  0x34   :  { %v266_v9 = vmax.f32 %v264_v33, %v265_v0  ;;  %v274_v10 = vrot.slane %v273_v40, 1  ;;  %v316_v11 = vmax.f32 %v314_v56, %v315_v53  ;;  %v324_v19 = vrot.slane %v323_v35, 2 }
  0x35   :  { %v309_v51 = vmax.f32 %v307_v45, %v308_v62  ;;  %v334_v58 = vrot.slane %v333_v2, 2  ;;  %v342_v1 = vrot.slane %v341_v4, 2  ;;  %v925_v22 = vmax.f32 %v257_v37, %v258_v57 }
  0x36   :  { %v267_v30 = vrot.slane %v266_v9, 1  ;;  %v317_v16 = vrot.slane %v316_v11, 2  ;;  %v325_v23 = vmax.f32 %v323_v35, %v324_v19  ;;  %v349_v43 = vrot.slane %v348_v13, 2 }
  0x37   :  { %v310_v36 = vrot.slane %v309_v51, 1  ;;  %v335_v24 = vmax.f32 %v333_v2, %v334_v58  ;;  %v343_v47 = vmax.f32 %v341_v4, %v342_v1  ;;  %v927_v46 = vmax.f32 %v273_v40, %v274_v10 }
  0x38   :  { %v318_v29 = vmax.f32 %v316_v11, %v317_v16  ;;  %v326_v21 = vrot.slane %v325_v23, 1  ;;  %v353_v34 = vsel %vm338_vm6, %v329_v28, -inf  ;;  %v930_v49 = vmax.f32 %v266_v9, %v267_v30 }
  0x39   :  { %v336_v50 = vrot.slane %v335_v24, 1  ;;  %v344_v33 = vrot.slane %v343_v47, 1  ;;  %v350_v25 = vmax.f32 %v348_v13, %v349_v43  ;;  %v932_v37 = vmax.f32 %v309_v51, %v310_v36 }
  0x3a   :  { %v319_v55 = vrot.slane %v318_v29, 1  ;;  %v354_v56 = vrot.slane %v353_v34, 4  ;;  %v934_v44 = vmax.f32 %v325_v23, %v326_v21  ;;  %v379_v20 = vmax.f32 %v661_v27, %v732_v52 }
  0x3b   :  { %v936_v57 = vmax.f32 %v335_v24, %v336_v50  ;;  %v351_v45 = vrot.slane %v350_v25, 1  ;;  %v940_v32 = vmax.f32 %v343_v47, %v344_v33  ;;  %v375_v0 = vmax.f32 %v372_v18, %v862_v14 }
  0x3c   :  { %v355_v28 = vmax.f32 %v353_v34, %v354_v56  ;;  %v943_v40 = vmax.f32 %v318_v29, %v319_v55  ;;  %v411_v35 = vmax.f32 %v816_v41, %v820_v42  ;;  %v412_v62 = vmax.f32 %v827_v48, %v836_v60 }
  0x3d   :  { %v945_v53 = vmax.f32 %v350_v25, %v351_v45  ;;  %v382_v4 = vmax.f32 %v379_v20, %v871_v31  ;;  %v383_v27 = vsel %vm330_vm5, %v375_v0, -inf  ;;  %v390_v52 = vsel %vm338_vm6, %v375_v0, -inf }
  0x3e   :  { %v356_v2 = vrot.slane %v355_v28, 2  ;;  %v384_v6 = vrot.slane %v383_v27, 4  ;;  %v391_v9 = vrot.slane %v390_v52, 4  ;;  %v413_v14 = vsel %vm330_vm5, %v411_v35, -inf }
  0x3f   :  { %v420_v18 = vsel %vm338_vm6, %v411_v35, -inf  ;;  %v397_v11 = vsel %vm330_vm5, %v382_v4, -inf  ;;  %v404_v41 = vsel %vm338_vm6, %v382_v4, -inf  ;;  %v414_v42 = vrot.slane %v413_v14, 4 }
  0x40   :  { %v357_v10 = vmax.f32 %v355_v28, %v356_v2  ;;  %v385_v48 = vmax.f32 %v383_v27, %v384_v6  ;;  %v392_v60 = vmax.f32 %v390_v52, %v391_v9  ;;  %v398_v19 = vrot.slane %v397_v11, 4 }
  0x41   :  { %v405_v31 = vrot.slane %v404_v41, 4  ;;  %v415_v51 = vmax.f32 %v413_v14, %v414_v42  ;;  %v421_v58 = vrot.slane %v420_v18, 4  ;;  %v427_v1 = vsel %vm330_vm5, %v412_v62, -inf }
  0x42   :  { %v386_v13 = vrot.slane %v385_v48, 2  ;;  %v393_v30 = vrot.slane %v392_v60, 2  ;;  %v399_v16 = vmax.f32 %v397_v11, %v398_v19  ;;  %v358_v36 = vrot.slane %v357_v10, 1 }
  0x43   :  { %v406_v23 = vmax.f32 %v404_v41, %v405_v31  ;;  %v416_v24 = vrot.slane %v415_v51, 2  ;;  %v422_v47 = vmax.f32 %v420_v18, %v421_v58  ;;  %v428_v43 = vrot.slane %v427_v1, 4 }
  0x44   :  { %v387_v29 = vmax.f32 %v385_v48, %v386_v13  ;;  %v394_v21 = vmax.f32 %v392_v60, %v393_v30  ;;  %v400_v34 = vrot.slane %v399_v16, 2  ;;  %v434_v56 = vsel %vm338_vm6, %v412_v62, -inf }
  0x45   :  { %v407_v50 = vrot.slane %v406_v23, 2  ;;  %v417_v33 = vmax.f32 %v415_v51, %v416_v24  ;;  %v423_v25 = vrot.slane %v422_v47, 2  ;;  %v429_v55 = vmax.f32 %v427_v1, %v428_v43 }
  0x46   :  { %v388_v45 = vrot.slane %v387_v29, 1  ;;  %v395_v20 = vrot.slane %v394_v21, 1  ;;  %v401_v28 = vmax.f32 %v399_v16, %v400_v34  ;;  %v435_v27 = vrot.slane %v434_v56, 4 }
  0x47   :  { %v408_v0 = vmax.f32 %v406_v23, %v407_v50  ;;  %v418_v35 = vrot.slane %v417_v33, 1  ;;  %v424_v2 = vmax.f32 %v422_v47, %v423_v25  ;;  %v430_v4 = vrot.slane %v429_v55, 2 }
  0x48   :  { %v359_v52 = vmax.f32 %v357_v10, %v358_v36  ;;  %v389_v6 = vmax.f32 %v387_v29, %v388_v45  ;;  %v402_v9 = vrot.slane %v401_v28, 1  ;;  %v960_v18 = vmax.f32 %v394_v21, %v395_v20 }
  0x49   :  { %v409_v14 = vrot.slane %v408_v0, 1  ;;  %v962_v11 = vmax.f32 %v417_v33, %v418_v35  ;;  %v431_v41 = vmax.f32 %v429_v55, %v430_v4  ;;  %v436_v42 = vmax.f32 %v434_v56, %v435_v27 }
  0x4a   :  { %v964_v48 = vmax.f32 %v401_v28, %v402_v9  ;;  %v425_v62 = vrot.slane %v424_v2, 1  ;;  %v455_v60 = vmax.f32 %v751_v59, %v780_v7  ;;  %v462_v10 = vmax.f32 %v800_v17, %v808_v26 }
  0x4b   :  { %v968_v19 = vmax.f32 %v408_v0, %v409_v14  ;;  %v432_v31 = vrot.slane %v431_v41, 1  ;;  %v437_v51 = vrot.slane %v436_v42, 2  ;;  %vm492_vm7 = vcmask 1040384  }
  0x4c   :  { %v456_v58 = vmax.f32 %v894_v3, %v455_v60  ;;  %vm494_vm8 = vcmask 1041408   ;;  %vm496_vm9 = vcmask 1042432   ;;  %v463_v30 = vmax.f32 %v902_v12, %v462_v10 }
  0x4d   :  { %v433_v1 = vmax.f32 %v431_v41, %v432_v31  ;;  %v438_v13 = vmax.f32 %v436_v42, %v437_v51  ;;  %v493_v59 = vsel %vm492_vm7, %v873_v54, %v857_v61  ;;  %vm498_vm10 = vcmask 1043456  }
  0x4e   :  { %v464_v7 = vsel %vm330_vm5, %v456_v58, -inf  ;;  %v471_v16 = vsel %vm338_vm6, %v456_v58, -inf  ;;  %v495_v17 = vsel %vm494_vm8, %v493_v59, %v875_v38  ;;  %v478_v36 = vsel %vm330_vm5, %v463_v30, -inf }
  0x4f   :  { %v439_v26 = vrot.slane %v438_v13, 1  ;;  %v465_v3 = vrot.slane %v464_v7, 4  ;;  %v472_v23 = vrot.slane %v471_v16, 4  ;;  %v479_v24 = vrot.slane %v478_v36, 4 }
  0x50   :  { %v485_v12 = vsel %vm338_vm6, %v463_v30, -inf  ;;  %v497_v47 = vsel %vm496_vm9, %v495_v17, %v881_v63  ;;  %vm500_vm11 = vcmask 1044480   ;;  %vm502_vm12 = vcmask 1045504  }
  0x51   :  { %v440_v61 = vmax.f32 %v438_v13, %v439_v26  ;;  %v466_v54 = vmax.f32 %v464_v7, %v465_v3  ;;  %v473_v43 = vmax.f32 %v471_v16, %v472_v23  ;;  %v486_v29 = vrot.slane %v485_v12, 4 }
  0x52   :  { %v480_v21 = vmax.f32 %v478_v36, %v479_v24  ;;  %v499_v38 = vsel %vm498_vm10, %v497_v47, %v888_v5  ;;  %vm504_vm13 = vcmask 1046528   ;;  %v506_v56 = vsel %vm492_vm7, %v925_v22, %v930_v49 }
  0x53   :  { %v467_v34 = vrot.slane %v466_v54, 2  ;;  %v474_v50 = vrot.slane %v473_v43, 2  ;;  %v487_v33 = vmax.f32 %v485_v12, %v486_v29  ;;  %v501_v25 = vsel %vm500_vm11, %v499_v38, %v877_v39 }
  0x54   :  { %v481_v55 = vrot.slane %v480_v21, 2  ;;  %v503_v63 = vsel %vm502_vm12, %v501_v25, %v898_v8  ;;  %v513_v45 = vsel %vm492_vm7, %v945_v53, %v359_v52  ;;  %v426_v35 = vmax.f32 %v424_v2, %v425_v62 }
  0x55   :  { %v468_v5 = vmax.f32 %v466_v54, %v467_v34  ;;  %v475_v20 = vmax.f32 %v473_v43, %v474_v50  ;;  %v488_v28 = vrot.slane %v487_v33, 2  ;;  %v505_v0 = vsel %vm504_vm13, %v503_v63, %v904_v15 }
  0x56   :  { %v482_v4 = vmax.f32 %v480_v21, %v481_v55  ;;  %v507_v39 = vsel %vm494_vm8, %v506_v56, %v927_v46  ;;  %v514_v8 = vsel %vm494_vm8, %v513_v45, %v389_v6  ;;  %525 = vst.msk [vmem:[%s1041_s1] sm:$0xff] %vm40_vm0, %v505_v0  ;;  %v520_v2 = vsel %vm492_vm7, %v433_v1, %v440_v61 }
  0x57   :  { %v469_v22 = vrot.slane %v468_v5, 1  ;;  %v476_v49 = vrot.slane %v475_v20, 1  ;;  %v489_v53 = vmax.f32 %v487_v33, %v488_v28  ;;  %v508_v27 = vsel %vm496_vm9, %v507_v39, %v932_v37 }
  0x58   :  { %v483_v52 = vrot.slane %v482_v4, 1  ;;  %v509_v15 = vsel %vm498_vm10, %v508_v27, %v943_v40  ;;  %v515_v46 = vsel %vm496_vm9, %v514_v8, %v960_v18  ;;  %vm528_vm14 = vcmask 62464  }
  0x59   :  { %v470_v6 = vmax.f32 %v468_v5, %v469_v22  ;;  %v477_v9 = vmax.f32 %v475_v20, %v476_v49  ;;  %v490_v14 = vrot.slane %v489_v53, 1  ;;  %v510_v41 = vsel %vm500_vm11, %v509_v15, %v934_v44 }
  0x5a   :  { %v484_v42 = vmax.f32 %v482_v4, %v483_v52  ;;  %v511_v62 = vsel %vm502_vm12, %v510_v41, %v936_v57  ;;  %v516_v37 = vsel %vm498_vm10, %v515_v46, %v964_v48 }
  0x5b   :  { %v491_v60 = vmax.f32 %v489_v53, %v490_v14  ;;  %v512_v40 = vsel %vm504_vm13, %v511_v62, %v940_v32  ;;  %v517_v18 = vsel %vm500_vm11, %v516_v37, %v968_v19  ;;  %v521_v31 = vsel %vm494_vm8, %v520_v2, %v470_v6 }
  0x5c   :  { %v518_v51 = vsel %vm502_vm12, %v517_v18, %v962_v11  ;;  %v522_v44 = vsel %vm496_vm9, %v521_v31, %v477_v9  ;;  %526 = vst.msk [vmem:[%s1041_s1 + $0x8] sm:$0xff] %vm40_vm0, %v512_v40 }
  0x5d   :  { %v519_v57 = vsel %vm504_vm13, %v518_v51, %v426_v35  ;;  %v523_v32 = vsel %vm498_vm10, %v522_v44, %v484_v42 }
  0x5e   :  { %v524_v48 = vsel %vm500_vm11, %v523_v32, %v491_v60  ;;  %527 = vst.msk [vmem:[%s1041_s1 + $0x10] sm:$0xff] %vm40_vm0, %v519_v57 }
  0x5f   :  { %529 = vst.msk [vmem:[%s1041_s1 + $0x18] sm:$0x3f] %vm528_vm14, %v524_v48 }

</bundles_post_ra>
